<compile_context>
chip_gen: v5e
topology: v5e:2x2
jax: 0.10.0
libtpu: 0.0.40
codegen_flags: <defaults>
</compile_context>

<pallas_src>
import jax
import jax.numpy as jnp
from jax.experimental import pallas as pl
from jax.experimental.pallas import tpu as pltpu


def target_head_kernel(x_ref, w1_ref, bn_ref, w2b_ref, out_ref):
    eps = 1e-5
    f = w1_ref.shape[1]                           # hidden width F

    x = x_ref[...]                                # (B, F) f32

    # ---- Linear 1: h = x @ W1  (W1 pre-transposed to (in, out)).
    # bf16 MXU inputs, f32 accumulation.  Bias omitted (cancels under
    # training-mode BN).
    h = jnp.dot(x.astype(jnp.bfloat16),
                w1_ref[...].astype(jnp.bfloat16),
                preferred_element_type=jnp.float32)          # (B, F) f32

    # ---- BatchNorm1d (training mode: batch stats, biased variance) + ReLU.
    # Centered variance (two-pass form) avoids cancellation; affine folded
    # into one scale + shift.
    mean = jnp.mean(h, axis=0, keepdims=True)                # (1, F)
    centered = h - mean
    var = jnp.mean(centered * centered, axis=0, keepdims=True)
    inv_std = jax.lax.rsqrt(var + eps)
    gamma = bn_ref[0:1, :]                                   # (1, F)
    beta = bn_ref[1:2, :]                                    # (1, F)
    h = jnp.maximum(centered * (gamma * inv_std) + beta, 0.0)

    # ---- Linear 2: logits = h @ W2 + b2  (W2 pre-transposed to (F, C),
    # bias folded in as the last row of w2b).
    w2b = w2b_ref[...]                                       # (F+1, C)
    logits = jnp.dot(h.astype(jnp.bfloat16),
                     w2b[:f, :].astype(jnp.bfloat16),
                     preferred_element_type=jnp.float32) + w2b[f:, :]  # (B, C)

    # ---- softmax over classes (exact divide -> rows sum to 1 at f32 prec).
    m = jnp.max(logits, axis=-1, keepdims=True)
    e = jnp.exp(logits - m)
    denom = jnp.sum(e, axis=-1, keepdims=True)
    out_ref[...] = (e / denom).astype(out_ref.dtype)


def target_head(x, w1, gamma, beta, w2, b2):
    """TargetHead forward.

    Args (PyTorch layout):
      x:     (B, F)
      w1:    (F, F)  Linear-1 weight, (out, in)
      gamma: (F,)    BatchNorm1d weight
      beta:  (F,)    BatchNorm1d bias
      w2:    (C, F)  Linear-2 weight, (out, in)
      b2:    (C,)    Linear-2 bias
    Returns:
      (B, C) softmax probabilities, f32.
    """
    B, F = x.shape
    C = w2.shape[0]

    # One-time wrapper-side packing (in a real model these would be stored
    # pre-packed): pre-transpose weights for the NN-form matmuls, stack
    # gamma/beta, and fold b2 into w2 -> 4 kernel operands instead of 6.
    w1t = jnp.transpose(w1)                                      # (F, F) in,out
    bn = jnp.stack([gamma.reshape(F), beta.reshape(F)], axis=0)  # (2, F)
    w2b = jnp.concatenate([jnp.transpose(w2), b2.reshape(1, C)], axis=0)  # (F+1, C)

    vmem = pl.BlockSpec(memory_space=pltpu.MemorySpace.VMEM)

    flops = 2 * B * F * F + 2 * B * F * C
    transcendentals = B * C + F
    bytes_accessed = 4 * (B * F + F * F + 2 * F + (F + 1) * C + B * C)

    return pl.pallas_call(
        target_head_kernel,
        in_specs=[vmem] * 4,
        out_specs=vmem,
        out_shape=jax.ShapeDtypeStruct((B, C), jnp.float32),
        cost_estimate=pl.CostEstimate(
            flops=flops,
            transcendentals=transcendentals,
            bytes_accessed=bytes_accessed),
    )(x, w1t, bn, w2b)


def target_head_ref(x, w1, gamma, beta, w2, b2):
    """Pure-JAX f32 reference (training-mode BN, biased variance, b1 = 0)."""
    eps = 1e-5
    h = x @ w1.T
    mean = jnp.mean(h, axis=0, keepdims=True)
    var = jnp.mean((h - mean) ** 2, axis=0, keepdims=True)
    h = (h - mean) / jnp.sqrt(var + eps) * gamma + beta
    h = jnp.maximum(h, 0.0)
    logits = h @ w2.T + b2
    return jax.nn.softmax(logits, axis=-1)


if __name__ == "__main__":
    B, F, C = 8, 32, 8   # batch, num_features, num_classes

    key = jax.random.PRNGKey(0)
    kx, kw1, kw2 = jax.random.split(key, 3)

    x = jax.random.normal(kx, (B, F), dtype=jnp.float32)

    # Module __init__ sets Linear biases to 0; BatchNorm1d init gamma=1, beta=0.
    w1 = jax.random.normal(kw1, (F, F), dtype=jnp.float32) * (1.0 / jnp.sqrt(F))
    gamma = jnp.ones((F,), dtype=jnp.float32)
    beta = jnp.zeros((F,), dtype=jnp.float32)
    w2 = jax.random.normal(kw2, (C, F), dtype=jnp.float32) * (1.0 / jnp.sqrt(F))
    b2 = jnp.zeros((C,), dtype=jnp.float32)

    out = jax.block_until_ready(target_head(x, w1, gamma, beta, w2, b2))

    assert out.shape == (B, C)
    # Exact-divide softmax: rows sum to 1 at f32 precision.
    assert bool(jnp.allclose(jnp.sum(out, axis=-1), 1.0, atol=1e-4))
    # Kernel uses bf16 MXU inputs (f32 accumulate); compare against the pure
    # f32 reference with a tolerance that covers bf16 input rounding.
    ref = target_head_ref(x, w1, gamma, beta, w2, b2)
    assert bool(jnp.allclose(out, ref, atol=2e-2))

    print("KERNEL_OK")
</pallas_src>

<mosaic_0001>
module attributes {stable_mosaic.version = 11 : i64} {
  func.func @target_head_kernel(%arg0: memref<8x32xf32, #tpu.memory_space<vmem>>, %arg1: memref<32x32xf32, #tpu.memory_space<vmem>>, %arg2: memref<2x32xf32, #tpu.memory_space<vmem>>, %arg3: memref<33x8xf32, #tpu.memory_space<vmem>>, %arg4: memref<8x8xf32, #tpu.memory_space<vmem>>) attributes {dimension_semantics = [], scalar_prefetch = 0 : i64, scratch_operands = 0 : i64, tpu.core_type = #tpu.core_type<tc>} {
    %c0 = arith.constant 0 : index
    %c0_0 = arith.constant 0 : index
    %0 = vector.load %arg0[%c0, %c0_0] : memref<8x32xf32, #tpu.memory_space<vmem>>, vector<8x32xf32>
    %1 = arith.truncf %0 : vector<8x32xf32> to vector<8x32xbf16>
    %c0_1 = arith.constant 0 : index
    %c0_2 = arith.constant 0 : index
    %2 = vector.load %arg1[%c0_1, %c0_2] : memref<32x32xf32, #tpu.memory_space<vmem>>, vector<32x32xf32>
    %3 = arith.truncf %2 : vector<32x32xf32> to vector<32x32xbf16>
    %cst = arith.constant dense<0.000000e+00> : vector<8x32xf32>
    %4 = tpu.matmul %1, %3, %cst {dimension_numbers = #tpu.dot_dimension_numbers<[1], [0], [0], [1], [0, 0, 1, 1], [], []>} : vector<8x32xbf16>, vector<32x32xbf16>, vector<8x32xf32> -> vector<8x32xf32>
    %cst_3 = arith.constant dense<0.000000e+00> : vector<32xf32>
    %5 = vector.multi_reduction <add>, %4, %cst_3 [0] : vector<8x32xf32> to vector<32xf32>
    %6 = vector.shape_cast %5 : vector<32xf32> to vector<1x32xf32>
    %cst_4 = arith.constant 8.000000e+00 : f32
    %7 = vector.broadcast %cst_4 : f32 to vector<1x32xf32>
    %8 = arith.divf %6, %7 : vector<1x32xf32>
    %9 = vector.broadcast %8 : vector<1x32xf32> to vector<8x32xf32>
    %10 = arith.subf %4, %9 : vector<8x32xf32>
    %11 = arith.mulf %10, %10 : vector<8x32xf32>
    %cst_5 = arith.constant dense<0.000000e+00> : vector<32xf32>
    %12 = vector.multi_reduction <add>, %11, %cst_5 [0] : vector<8x32xf32> to vector<32xf32>
    %13 = vector.shape_cast %12 : vector<32xf32> to vector<1x32xf32>
    %cst_6 = arith.constant 8.000000e+00 : f32
    %14 = vector.broadcast %cst_6 : f32 to vector<1x32xf32>
    %15 = arith.divf %13, %14 : vector<1x32xf32>
    %cst_7 = arith.constant 9.99999974E-6 : f32
    %16 = vector.broadcast %cst_7 : f32 to vector<1x32xf32>
    %17 = arith.addf %15, %16 : vector<1x32xf32>
    %18 = math.rsqrt %17 : vector<1x32xf32>
    %c0_8 = arith.constant 0 : index
    %c0_9 = arith.constant 0 : index
    %19 = vector.load %arg2[%c0_8, %c0_9] : memref<2x32xf32, #tpu.memory_space<vmem>>, vector<1x32xf32>
    %c1 = arith.constant 1 : index
    %c0_10 = arith.constant 0 : index
    %20 = vector.load %arg2[%c1, %c0_10] : memref<2x32xf32, #tpu.memory_space<vmem>>, vector<1x32xf32>
    %21 = arith.mulf %19, %18 : vector<1x32xf32>
    %22 = vector.broadcast %21 : vector<1x32xf32> to vector<8x32xf32>
    %23 = arith.mulf %10, %22 : vector<8x32xf32>
    %24 = vector.broadcast %20 : vector<1x32xf32> to vector<8x32xf32>
    %25 = arith.addf %23, %24 : vector<8x32xf32>
    %cst_11 = arith.constant 0.000000e+00 : f32
    %26 = vector.broadcast %cst_11 : f32 to vector<8x32xf32>
    %27 = arith.maximumf %25, %26 : vector<8x32xf32>
    %c0_12 = arith.constant 0 : index
    %c0_13 = arith.constant 0 : index
    %28 = vector.load %arg3[%c0_12, %c0_13] : memref<33x8xf32, #tpu.memory_space<vmem>>, vector<33x8xf32>
    %29 = arith.truncf %27 : vector<8x32xf32> to vector<8x32xbf16>
    %30 = vector.extract_strided_slice %28 {offsets = [0, 0], sizes = [32, 8], strides = [1, 1]} : vector<33x8xf32> to vector<32x8xf32>
    %31 = arith.truncf %30 : vector<32x8xf32> to vector<32x8xbf16>
    %cst_14 = arith.constant dense<0.000000e+00> : vector<8x8xf32>
    %32 = tpu.matmul %29, %31, %cst_14 {dimension_numbers = #tpu.dot_dimension_numbers<[1], [0], [0], [1], [0, 0, 1, 1], [], []>} : vector<8x32xbf16>, vector<32x8xbf16>, vector<8x8xf32> -> vector<8x8xf32>
    %33 = vector.extract_strided_slice %28 {offsets = [32, 0], sizes = [1, 8], strides = [1, 1]} : vector<33x8xf32> to vector<1x8xf32>
    %34 = vector.broadcast %33 : vector<1x8xf32> to vector<8x8xf32>
    %35 = arith.addf %32, %34 : vector<8x8xf32>
    %cst_15 = arith.constant dense<0xFF800000> : vector<8xf32>
    %36 = vector.multi_reduction <maximumf>, %35, %cst_15 [1] : vector<8x8xf32> to vector<8xf32>
    %37 = vector.shape_cast %36 : vector<8xf32> to vector<8x1xf32>
    %38 = vector.broadcast %37 : vector<8x1xf32> to vector<8x8xf32>
    %39 = arith.subf %35, %38 : vector<8x8xf32>
    %40 = math.exp %39 : vector<8x8xf32>
    %cst_16 = arith.constant dense<0.000000e+00> : vector<8xf32>
    %41 = vector.multi_reduction <add>, %40, %cst_16 [1] : vector<8x8xf32> to vector<8xf32>
    %42 = vector.shape_cast %41 : vector<8xf32> to vector<8x1xf32>
    %43 = vector.broadcast %42 : vector<8x1xf32> to vector<8x8xf32>
    %44 = arith.divf %40, %43 : vector<8x8xf32>
    %c0_17 = arith.constant 0 : index
    %c0_18 = arith.constant 0 : index
    %45 = vector.load %arg4[%c0_17, %c0_18] : memref<8x8xf32, #tpu.memory_space<vmem>>, vector<8x8xf32>
    tpu.vector_store %arg4[%c0_17, %c0_18], %44 {strides = array<i32>} : memref<8x8xf32, #tpu.memory_space<vmem>>, vector<8x8xf32>,
    return
  }
}

</mosaic_0001>

<bundles_post_ra>
// kernel: tpu_custom_call.1
= control target key start
LH: loop header
LB: loop body
LE: loop exit
PB: predicated region body
PF: predicated region fallthrough
CT: control target
= control target key end

     0   :  { %s268_s0 = inlined_call_operand.vmem [shape: f32[8,32], index: 0, kind: input, shape index: {}]   ;;  %s269_s1 = inlined_call_operand.vmem [shape: f32[32,32], index: 1, kind: input, shape index: {}]   ;;  %s270_s2 = inlined_call_operand.vmem [shape: f32[2,32], index: 2, kind: input, shape index: {}]   ;;  %s271_s3 = inlined_call_operand.vmem [shape: f32[33,8], index: 3, kind: input, shape index: {}]   ;;  %s272_s4 = inlined_call_operand.hbm [shape: f32[8,8], index: 4, kind: output, shape index: {}]  }
   0x1   :  { %v23_v0 = vld [vmem:[%s269_s1 + $0x10] sm:$0xff]  ;;  %v24_v1 = vld [vmem:[%s269_s1 + $0x18] sm:$0xff]  ;;  %v21_v2 = vld [vmem:[%s269_s1] sm:$0xff] }
   0x2   :  { %v26_v3 = vpack.c.bf16 %v24_v1, %v23_v0  ;;  %v22_v4 = vld [vmem:[%s269_s1 + $0x8] sm:$0xff] }
   0x3   :  { %9 = vsyncpa [#allocation3], 0  ;;  %v25_v5 = vpack.c.bf16 %v22_v4, %v21_v2  ;;  %v19_v6 = vld [vmem:[%s268_s0] sm:$0xff]  ;;  %vm27_vm0 = vcmask 261120   ;;  %v195_v8 = vmov 8.0   ;;  %v90_v31 = vld [vmem:[%s271_s3 + $0x10] sm:$0xff] }
   0x4   :  { %37 = vmatpush.bf16.msra.mxu0 %v26_v3  ;;  %v20_v7 = vpack.c.bf16 %v19_v6, %v19_v6  ;;  %161 = vrcp.f32 %v195_v8  ;;  %v91_v32 = vld [vmem:[%s271_s3 + $0x18] sm:$0xff]  ;;  %v88_v35 = vld [vmem:[%s271_s3] sm:$0xff]  ;;  %v89_v36 = vld [vmem:[%s271_s3 + $0x8] sm:$0xff]  ;;  %vm113_vm5 = vcmask 64512   ;;  %s146_s13 = sshll.u32 %s272_s4, 4  ;;  %s147_s13 = int_to_ptr.hbm [resolvable:$true] %s146_s13 }
   0x5   :  { %v95_v33 = vpack.c.bf16 %v91_v32, %v90_v31  ;;  %v94_v37 = vpack.c.bf16 %v89_v36, %v88_v35  ;;  %v80_v48 = vld [vmem:[%s270_s2] sm:$0x1]  ;;  %v159_v52 = vld [vmem:[%s270_s2 + $0x1] ss:$0 sm:$0xff]  ;;  %s196_s2 = smov [#allocation2]  }
   0x6   :  { %v160_v57 = vld [vmem:[%s271_s3 + $0x20] ss:$0 sm:$0xff]  ;;  %s144_s3 = sshll.u32 %s196_s2, 4  ;;  %s145_s3 = int_to_ptr.vmem [resolvable:$true] %s144_s3 }
   0x7   :  { %106 = vmatpush.bf16.msra.mxu1 %v95_v33 }
   0x8   :  { %38 = vmatpush.bf16.msra.mxu0 %v25_v5 }
   0xa   :  { %v162_v9 = vpop.eup %161 }
   0xb   :  { %155 = vmatmul.msk.bf16.vlgmr.msra.gmra.mxu0 %vm27_vm0, %v20_v7  ;;  %v52_v10 = vmul.f32 8.0, %v162_v9  ;;  %vm56_vm1 = vweird.f32 %v162_v9  ;;  %107 = vmatpush.bf16.msra.mxu1 %v94_v37 }
   0xd   :  { %v53_v11 = vsub.f32 1.0, %v52_v10 }
   0xf   :  { %v54_v15 = vmul.f32 %v162_v9, %v53_v11 }
  0x11   :  { %v55_v18 = vadd.f32 %v162_v9, %v54_v15 }
  0x13   :  { %v57_v22 = vsel %vm56_vm1, %v162_v9, %v55_v18 }
  0x88   :  { %v40_v12 = vpop.f32.mrf.mxu0 }
  0x89   :  { %v44_v13 = vsel %vm27_vm0, %v40_v12, 0.0 }
  0x8a   :  { %v45_v14 = vrot.slane %v44_v13, 4 }
  0x8c   :  { %v46_v16 = vadd.f32 %v45_v14, %v44_v13 }
  0x8e   :  { %v47_v17 = vrot.slane %v46_v16, 2 }
  0x90   :  { %v48_v19 = vadd.f32 %v47_v17, %v46_v16  ;;  %v42_v20 = vpop.f32.mrf.mxu0 }
  0x92   :  { %v49_v21 = vrot.slane %v48_v19, 1 }
  0x94   :  { %v50_v23 = vadd.f32 %v49_v21, %v48_v19 }
  0x96   :  { %v58_v24 = vmul.f32 %v57_v22, %v50_v23 }
  0x98   :  { %v59_v25 = vsub.f32 %v40_v12, %v58_v24 }
  0x9a   :  { %v60_v26 = vmul.f32 %v59_v25, %v59_v25 }
  0x9c   :  { %v61_v27 = vsel %vm27_vm0, %v60_v26, 0.0 }
  0x9d   :  { %v62_v28 = vrot.slane %v61_v27, 4 }
  0x9f   :  { %v63_v29 = vadd.f32 %v62_v28, %v61_v27 }
  0xa1   :  { %v64_v30 = vrot.slane %v63_v29, 2 }
  0xa3   :  { %v65_v34 = vadd.f32 %v64_v30, %v63_v29 }
  0xa5   :  { %v66_v38 = vrot.slane %v65_v34, 1 }
  0xa7   :  { %v67_v39 = vadd.f32 %v66_v38, %v65_v34 }
  0xa9   :  { %v68_v40 = vmul.f32 %v67_v39, %v57_v22 }
  0xab   :  { %v69_v41 = vadd.f32 1e-05, %v68_v40 }
  0xad   :  { %163 = vrsqrt.f32 %v69_v41  ;;  %vm76_vm3 = vweird.f32 %v69_v41 }
  0xb3   :  { %v164_v42 = vpop.eup %163 }
  0xb4   :  { %v71_v43 = vmul.f32 %v164_v42, %v69_v41  ;;  %vm77_vm2 = vweird.f32 %v164_v42 }
  0xb5   :  { %vm78_vm4 = vmor %vm76_vm3, %vm77_vm2 }
  0xb6   :  { %v72_v44 = vmul.f32 %v164_v42, %v71_v43 }
  0xb8   :  { %v73_v45 = vmul.f32 0.5, %v72_v44 }
  0xba   :  { %v74_v46 = vsub.f32 1.5, %v73_v45 }
  0xbc   :  { %v75_v47 = vmul.f32 %v164_v42, %v74_v46 }
  0xbe   :  { %v79_v49 = vsel %vm78_vm4, %v164_v42, %v75_v47 }
  0xbf   :  { %v82_v50 = vmul.f32 %v80_v48, %v79_v49 }
  0xc1   :  { %v83_v51 = vperm.slane %v82_v50, 0 }
  0xc3   :  { %v84_v53 = vmul.f32 %v83_v51, %v59_v25 }
  0xc5   :  { %v86_v54 = vadd.f32 %v159_v52, %v84_v53 }
  0xc7   :  { %v87_v55 = vmax.f32 %v86_v54, 0.0 }
  0xc9   :  { %v93_v56 = vpack.c.bf16 %v87_v55, %v87_v55 }
  0xcb   :  { %156 = vmatmul.msk.bf16.vlgmr.msra.gmra.mxu1 %vm27_vm0, %v93_v56 }
 0x148   :  { %v109_v58 = vpop.f32.mrf.mxu1 }
 0x149   :  { %v110_v59 = vadd.f32 %v160_v57, %v109_v58 }
 0x14b   :  { %v114_v60 = vsel %vm113_vm5, %v110_v59, -inf }
 0x14c   :  { %115 = vmax.xlane.f32.xlu0 %v114_v60 }
 0x150   :  { %v111_v61 = vpop.f32.mrf.mxu1 }
 0x1bf   :  { %v116_v62 = vpop.xlane.xlu0 %115 }
 0x1c0   :  { %v117_v63 = vsub.f32 %v110_v59, %v116_v62 }
 0x1c2   :  { %v118_v0 = vmul.f32 1.442695, %v117_v63 }
 0x1c4   :  { %165 = vpow2.f32 %v118_v0 }
 0x1ca   :  { %v166_v1 = vpop.eup %165 }
 0x1cb   :  { %v120_v2 = vsel %vm113_vm5, %v166_v1, 0.0 }
 0x1cc   :  { %121 = vadd.xlane.f32.xlu0 %v120_v2 }
 0x23f   :  { %v122_v3 = vpop.xlane.xlu0 %121 }
 0x240   :  { %167 = vrcp.f32 %v122_v3  ;;  %v134_v7 = vand.u32 2147483648, %v122_v3  ;;  %v132_v9 = vand.u32 2147483647, %v122_v3  ;;  %vm128_vm7 = vweird.f32 %v122_v3 }
 0x242   :  { %v135_v11 = vor.u32 1.1754944e-38, %v134_v7  ;;  %vm133_vm9 = vcmp.eq.f32.partialorder %v132_v9, 8.507059e+37 }
 0x246   :  { %v168_v4 = vpop.eup %167 }
 0x247   :  { %v124_v5 = vmul.f32 %v168_v4, %v122_v3  ;;  %vm129_vm6 = vweird.f32 %v168_v4 }
 0x248   :  { %vm130_vm8 = vmor %vm128_vm7, %vm129_vm6 }
 0x249   :  { %v125_v6 = vsub.f32 1.0, %v124_v5 }
 0x24b   :  { %v126_v8 = vmul.f32 %v168_v4, %v125_v6 }
 0x24d   :  { %v127_v10 = vadd.f32 %v168_v4, %v126_v8 }
 0x24f   :  { %v131_v12 = vsel %vm130_vm8, %v168_v4, %v127_v10 }
 0x250   :  { %v136_v13 = vsel %vm133_vm9, %v135_v11, %v131_v12 }
 0x251   :  { %v137_v14 = vmul.f32 %v166_v1, %v136_v13 }
 0x253   :  { %138 = vst.msk [vmem:[#allocation2] sm:$0xff] %vm113_vm5, %v137_v14 }
 0x254   :  { %149 = dma.vmem_to_hbm [thread:$0]  %s145_s3, 128, %s147_s13, [#allocation3]  }
 0x255   :  { %193 = dma.done.wait [#allocation3], 128  }
 0x256   :  { %194 = vsyncadd [#allocation3], 4294967168 }
 0x257   :  { %154 = vsyncpa [#allocation3], 1 }

</bundles_post_ra>
